<compile_context>
chip_gen: v7x
topology: tpu7x:2x2x1
jax: 0.10.0
libtpu: 0.0.40
codegen_flags: <defaults>
</compile_context>

<pallas_src>
import functools
import math

import jax
import jax.numpy as jnp
from jax.experimental import pallas as pl
from jax.experimental.pallas import tpu as pltpu


def _patch_merging_kernel(xh0_ref, xh1_ref, gamma_ref, beta_ref, w_ref, b_ref, o_ref):
    # xh0_ref/xh1_ref: (tr, 1, W2, 2C)  rows of [w-off0 | w-off1] channels for
    #                                   h-offset 0 / 1 of each 2x2 neighborhood
    # gamma/beta:      (1, 4C) f32      LayerNorm affine (pre-cast in wrapper)
    # w_ref:           (4C, 2C) bf16    reduction weight, (in, out) layout
    # b_ref:           (1, 2C) f32      reduction bias
    # o_ref:           (tr*W2, 2C)      output row tile
    tr, _, w2, c2 = xh0_ref.shape
    rows = tr * w2
    h0 = xh0_ref[...].reshape(rows, c2)
    h1 = xh1_ref[...].reshape(rows, c2)
    # Feature order along 4C: [h0w0, h0w1, h1w0, h1w1] == permute+flatten in torch.
    x = jnp.concatenate([h0, h1], axis=-1).astype(jnp.float32)      # (rows, 4C)

    # LayerNorm over 4C (biased variance, eps=1e-5: torch defaults), f32 stats.
    mean = jnp.mean(x, axis=-1, keepdims=True)
    x = x - mean                                                     # reuse buffer
    var = jnp.mean(x * x, axis=-1, keepdims=True)
    y = x * jax.lax.rsqrt(var + 1e-5) * gamma_ref[...] + beta_ref[...]

    # Linear(4C -> 2C): bf16 MXU matmul, f32 accumulation.
    out = jnp.dot(y.astype(jnp.bfloat16), w_ref[...],
                  preferred_element_type=jnp.float32)
    out = out + b_ref[...]
    o_ref[...] = out.astype(o_ref.dtype)


@functools.partial(jax.jit, static_argnames=("target_rows",))
def patch_merging(x, gamma, beta, w, b, *, target_rows=512):
    """PatchMerging forward (pre_norm=True).

    x: (B, H, W, C); gamma, beta: (4C,); w: (4C, 2C) (in, out); b: (2C,)
    Returns (B, H//2, W//2, 2C) in x.dtype.
    """
    B, H, W, C = x.shape
    assert H % 2 == 0 and W % 2 == 0
    C4, C2 = 4 * C, 2 * C
    R, W2 = B * (H // 2), W // 2
    N = R * W2

    # Free reshape (pure bitcast, no HBM round-trip): the last dim packs
    # [w-offset-0 channels | w-offset-1 channels]; dim 1 is the h-offset.
    xr = x.reshape(R, 2, W2, C2)

    # --- pick the row tile: big, VMEM-budgeted, sublane- & grid-friendly ----
    in_bytes = jnp.dtype(x.dtype).itemsize
    out_bytes = in_bytes
    # per flat output row: 2x-buffered input halves + 2x-buffered output
    # + ~3 full-width f32 temporaries inside the body.
    per_row = 2 * C4 * in_bytes + 2 * C2 * out_bytes + 3 * C4 * 4
    fixed = C4 * C2 * 2 + 64 * 1024                  # resident bf16 weight + slack
    vmem_budget = 24 * 1024 * 1024                   # comfortable on v7x's 64 MiB
    # TODO(synk): for C large enough that the (4C,2C) weight alone blows the
    # budget, the reduction would also need K-tiling; not needed at Swin scales.
    rows_cap = max(W2, (vmem_budget - fixed) // per_row)
    rows_target = min(target_rows, rows_cap)

    tr = max(1, rows_target // W2)                   # merged-rows (b, h//2) per step
    tr = min(tr, R)
    tr = min(tr, max(1, pl.cdiv(R, 4)))              # keep >=~4 steps for megacore
    need = 8 // math.gcd(W2, 8)                      # (tr*W2) % 8 == 0 when tr < R
    if tr < R:
        tr = max(need, (tr // need) * need)
    tr = min(tr, R)
    grid = (pl.cdiv(R, tr),)                         # ragged tail handled by Pallas

    # Pre-cast parameters to the compute dtypes (no per-step casts in-kernel).
    gamma2 = gamma.reshape(1, C4).astype(jnp.float32)
    beta2 = beta.reshape(1, C4).astype(jnp.float32)
    w_bf16 = w.astype(jnp.bfloat16)
    b2 = b.reshape(1, C2).astype(jnp.float32)

    out = pl.pallas_call(
        _patch_merging_kernel,
        out_shape=jax.ShapeDtypeStruct((N, C2), x.dtype),
        grid_spec=pltpu.PrefetchScalarGridSpec(
            num_scalar_prefetch=0,
            grid=grid,
            in_specs=[
                pl.BlockSpec((tr, 1, W2, C2), lambda i: (i, 0, 0, 0)),  # h-offset 0
                pl.BlockSpec((tr, 1, W2, C2), lambda i: (i, 1, 0, 0)),  # h-offset 1
                pl.BlockSpec((1, C4), lambda i: (0, 0)),                # gamma
                pl.BlockSpec((1, C4), lambda i: (0, 0)),                # beta
                pl.BlockSpec((C4, C2), lambda i: (0, 0)),               # weight bf16
                pl.BlockSpec((1, C2), lambda i: (0, 0)),                # bias
            ],
            out_specs=pl.BlockSpec((tr * W2, C2), lambda i: (i, 0)),
        ),
        compiler_params=pltpu.CompilerParams(
            dimension_semantics=("parallel",),
            vmem_limit_bytes=32 * 1024 * 1024,
        ),
    )(xr, xr, gamma2, beta2, w_bf16, b2)

    return out.reshape(B, H // 2, W2, C2)


def patch_merging_ref(x, gamma, beta, w, b):
    """Pure-JAX f32 reference mirroring the PyTorch forward (pre_norm=True)."""
    B, H, W, C = x.shape
    xm = x.reshape(B, H // 2, 2, W // 2, 2, C)
    xm = jnp.transpose(xm, (0, 1, 3, 2, 4, 5)).reshape(B, H // 2, W // 2, 4 * C)
    xm = xm.astype(jnp.float32)
    mean = jnp.mean(xm, axis=-1, keepdims=True)
    var = jnp.mean((xm - mean) ** 2, axis=-1, keepdims=True)
    y = (xm - mean) * jax.lax.rsqrt(var + 1e-5) * gamma + beta
    return (jnp.dot(y, w) + b).astype(x.dtype)


if __name__ == "__main__":
    # Small shapes: B=2, H=W=16, embedding_dim=64 -> output (2, 8, 8, 128).
    # C=64 keeps the output last dim lane-dense (2C = 128).
    B, H, W, C = 2, 16, 16, 64
    key = jax.random.PRNGKey(0)
    kx, kw, kb, kg, kbe = jax.random.split(key, 5)

    x = jax.random.normal(kx, (B, H, W, C), dtype=jnp.float32)
    # Linear weight stored as (in, out) = (4C, 2C) so the kernel does y @ w.
    w = jax.random.normal(kw, (4 * C, 2 * C), dtype=jnp.float32) * 0.02
    b = jax.random.normal(kb, (2 * C,), dtype=jnp.float32) * 0.02
    gamma = 1.0 + 0.1 * jax.random.normal(kg, (4 * C,), dtype=jnp.float32)
    beta = 0.1 * jax.random.normal(kbe, (4 * C,), dtype=jnp.float32)

    out = patch_merging(x, gamma, beta, w, b)
    out = jax.block_until_ready(out)

    ref = patch_merging_ref(x, gamma, beta, w, b)
    assert out.shape == (B, H // 2, W // 2, 2 * C), out.shape
    # Kernel matmul runs in bf16 (f32 accumulation) -> bf16-level tolerance.
    max_err = float(jnp.max(jnp.abs(out - ref)))
    assert jnp.allclose(out, ref, atol=2e-2, rtol=2e-2), f"mismatch: {max_err}"

    print("KERNEL_OK")
</pallas_src>

<mosaic_0001>
module attributes {stable_mosaic.version = 11 : i64} {
  func.func @_patch_merging_kernel(%arg0: i32, %arg1: memref<4x1x8x128xf32, #tpu.memory_space<vmem>>, %arg2: memref<4x1x8x128xf32, #tpu.memory_space<vmem>>, %arg3: memref<1x256xf32, #tpu.memory_space<vmem>>, %arg4: memref<1x256xf32, #tpu.memory_space<vmem>>, %arg5: memref<256x128xbf16, #tpu.memory_space<vmem>>, %arg6: memref<1x128xf32, #tpu.memory_space<vmem>>, %arg7: memref<32x128xf32, #tpu.memory_space<vmem>>) attributes {dimension_semantics = [#tpu.dimension_semantics<parallel>], iteration_bounds = array<i64: 4>, scalar_prefetch = 0 : i64, scratch_operands = 0 : i64, tpu.core_type = #tpu.core_type<tc>, window_params = [{transform_indices = @transform_0, window_bounds = array<i64: 4, 1, 8, 128>}, {transform_indices = @transform_1, window_bounds = array<i64: 4, 1, 8, 128>}, {pipeline_mode = #tpu.pipeline_mode<synchronous>, transform_indices = @transform_2, window_bounds = array<i64: 1, 256>}, {pipeline_mode = #tpu.pipeline_mode<synchronous>, transform_indices = @transform_3, window_bounds = array<i64: 1, 256>}, {pipeline_mode = #tpu.pipeline_mode<synchronous>, transform_indices = @transform_4, window_bounds = array<i64: 256, 128>}, {pipeline_mode = #tpu.pipeline_mode<synchronous>, transform_indices = @transform_5, window_bounds = array<i64: 1, 128>}, {transform_indices = @transform_6, window_bounds = array<i64: 32, 128>}]} {
    %c0 = arith.constant 0 : index
    %c0_0 = arith.constant 0 : index
    %c0_1 = arith.constant 0 : index
    %c0_2 = arith.constant 0 : index
    %0 = vector.load %arg1[%c0, %c0_0, %c0_1, %c0_2] : memref<4x1x8x128xf32, #tpu.memory_space<vmem>>, vector<4x1x8x128xf32>
    %1 = vector.shape_cast %0 : vector<4x1x8x128xf32> to vector<32x128xf32>
    %c0_3 = arith.constant 0 : index
    %c0_4 = arith.constant 0 : index
    %c0_5 = arith.constant 0 : index
    %c0_6 = arith.constant 0 : index
    %2 = vector.load %arg2[%c0_3, %c0_4, %c0_5, %c0_6] : memref<4x1x8x128xf32, #tpu.memory_space<vmem>>, vector<4x1x8x128xf32>
    %3 = vector.shape_cast %2 : vector<4x1x8x128xf32> to vector<32x128xf32>
    %4 = tpu.concatenate %1, %3 in 1 : vector<32x128xf32>, vector<32x128xf32> -> vector<32x256xf32>
    %cst = arith.constant dense<0.000000e+00> : vector<32xf32>
    %5 = vector.multi_reduction <add>, %4, %cst [1] : vector<32x256xf32> to vector<32xf32>
    %6 = vector.shape_cast %5 : vector<32xf32> to vector<32x1xf32>
    %cst_7 = arith.constant 2.560000e+02 : f32
    %7 = vector.broadcast %cst_7 : f32 to vector<32x1xf32>
    %8 = arith.divf %6, %7 : vector<32x1xf32>
    %9 = vector.broadcast %8 : vector<32x1xf32> to vector<32x256xf32>
    %10 = arith.subf %4, %9 : vector<32x256xf32>
    %11 = arith.mulf %10, %10 : vector<32x256xf32>
    %cst_8 = arith.constant dense<0.000000e+00> : vector<32xf32>
    %12 = vector.multi_reduction <add>, %11, %cst_8 [1] : vector<32x256xf32> to vector<32xf32>
    %13 = vector.shape_cast %12 : vector<32xf32> to vector<32x1xf32>
    %cst_9 = arith.constant 2.560000e+02 : f32
    %14 = vector.broadcast %cst_9 : f32 to vector<32x1xf32>
    %15 = arith.divf %13, %14 : vector<32x1xf32>
    %cst_10 = arith.constant 9.99999974E-6 : f32
    %16 = vector.broadcast %cst_10 : f32 to vector<32x1xf32>
    %17 = arith.addf %15, %16 : vector<32x1xf32>
    %18 = math.rsqrt %17 : vector<32x1xf32>
    %19 = vector.broadcast %18 : vector<32x1xf32> to vector<32x256xf32>
    %20 = arith.mulf %10, %19 : vector<32x256xf32>
    %c0_11 = arith.constant 0 : index
    %c0_12 = arith.constant 0 : index
    %21 = vector.load %arg3[%c0_11, %c0_12] : memref<1x256xf32, #tpu.memory_space<vmem>>, vector<1x256xf32>
    %22 = vector.broadcast %21 : vector<1x256xf32> to vector<32x256xf32>
    %23 = arith.mulf %20, %22 : vector<32x256xf32>
    %c0_13 = arith.constant 0 : index
    %c0_14 = arith.constant 0 : index
    %24 = vector.load %arg4[%c0_13, %c0_14] : memref<1x256xf32, #tpu.memory_space<vmem>>, vector<1x256xf32>
    %25 = vector.broadcast %24 : vector<1x256xf32> to vector<32x256xf32>
    %26 = arith.addf %23, %25 : vector<32x256xf32>
    %27 = arith.truncf %26 : vector<32x256xf32> to vector<32x256xbf16>
    %c0_15 = arith.constant 0 : index
    %c0_16 = arith.constant 0 : index
    %28 = vector.load %arg5[%c0_15, %c0_16] : memref<256x128xbf16, #tpu.memory_space<vmem>>, vector<256x128xbf16>
    %cst_17 = arith.constant dense<0.000000e+00> : vector<32x128xf32>
    %29 = tpu.matmul %27, %28, %cst_17 {dimension_numbers = #tpu.dot_dimension_numbers<[1], [0], [0], [1], [0, 0, 1, 1], [], []>} : vector<32x256xbf16>, vector<256x128xbf16>, vector<32x128xf32> -> vector<32x128xf32>
    %c0_18 = arith.constant 0 : index
    %c0_19 = arith.constant 0 : index
    %30 = vector.load %arg6[%c0_18, %c0_19] : memref<1x128xf32, #tpu.memory_space<vmem>>, vector<1x128xf32>
    %31 = vector.broadcast %30 : vector<1x128xf32> to vector<32x128xf32>
    %32 = arith.addf %29, %31 : vector<32x128xf32>
    %c0_20 = arith.constant 0 : index
    %c0_21 = arith.constant 0 : index
    %33 = vector.load %arg7[%c0_20, %c0_21] : memref<32x128xf32, #tpu.memory_space<vmem>>, vector<32x128xf32>
    tpu.vector_store %arg7[%c0_20, %c0_21], %32 {strides = array<i32>} : memref<32x128xf32, #tpu.memory_space<vmem>>, vector<32x128xf32>,
    return
  }
  func.func @transform_0(%arg0: i32) -> (i32, i32, i32, i32) {
    %c0_i32 = arith.constant 0 : i32
    %c0_i32_0 = arith.constant 0 : i32
    %c0_i32_1 = arith.constant 0 : i32
    %c0_i32_2 = arith.constant 0 : i32
    return %arg0, %c0_i32, %c0_i32_0, %c0_i32_1 : i32, i32, i32, i32
  }
  func.func @transform_1(%arg0: i32) -> (i32, i32, i32, i32) {
    %c1_i32 = arith.constant 1 : i32
    %c0_i32 = arith.constant 0 : i32
    %c0_i32_0 = arith.constant 0 : i32
    %c0_i32_1 = arith.constant 0 : i32
    return %arg0, %c1_i32, %c0_i32, %c0_i32_0 : i32, i32, i32, i32
  }
  func.func @transform_2(%arg0: i32) -> (i32, i32) {
    %c0_i32 = arith.constant 0 : i32
    %c0_i32_0 = arith.constant 0 : i32
    %c0_i32_1 = arith.constant 0 : i32
    return %c0_i32, %c0_i32_0 : i32, i32
  }
  func.func @transform_3(%arg0: i32) -> (i32, i32) {
    %c0_i32 = arith.constant 0 : i32
    %c0_i32_0 = arith.constant 0 : i32
    %c0_i32_1 = arith.constant 0 : i32
    return %c0_i32, %c0_i32_0 : i32, i32
  }
  func.func @transform_4(%arg0: i32) -> (i32, i32) {
    %c0_i32 = arith.constant 0 : i32
    %c0_i32_0 = arith.constant 0 : i32
    %c0_i32_1 = arith.constant 0 : i32
    return %c0_i32, %c0_i32_0 : i32, i32
  }
  func.func @transform_5(%arg0: i32) -> (i32, i32) {
    %c0_i32 = arith.constant 0 : i32
    %c0_i32_0 = arith.constant 0 : i32
    %c0_i32_1 = arith.constant 0 : i32
    return %c0_i32, %c0_i32_0 : i32, i32
  }
  func.func @transform_6(%arg0: i32) -> (i32, i32) {
    %c0_i32 = arith.constant 0 : i32
    %c0_i32_0 = arith.constant 0 : i32
    return %arg0, %c0_i32 : i32, i32
  }
}

</mosaic_0001>

<bundles_post_ra>
// kernel: patch_merging.1
= control target key start
LH: loop header
LB: loop body
LE: loop exit
PB: predicated region body
PF: predicated region fallthrough
CT: control target
= control target key end

     0   :  { %11 = vsyncpa [#allocation5], 0  ;;  %s1257_s0 = inlined_call_operand.vmem [shape: f32[16,2,8,128], index: 0, kind: input, shape index: {}, may-alias: {0,1}]   ;;  %s1258_s1 = inlined_call_operand.vmem [shape: f32[16,2,8,128], index: 1, kind: input, shape index: {}, may-alias: {0,1}]   ;;  %s1259_s2 = inlined_call_operand.vmem [shape: f32[1,256], index: 2, kind: input, shape index: {}]   ;;  %s1260_s3 = inlined_call_operand.vmem [shape: f32[1,256], index: 3, kind: input, shape index: {}]   ;;  %s1261_s4 = inlined_call_operand.vmem [shape: bf16[256,128], index: 4, kind: input, shape index: {}]   ;;  %s1262_s5 = inlined_call_operand.vmem [shape: f32[1,128], index: 5, kind: input, shape index: {}]   ;;  %s1263_s6 = inlined_call_operand.hbm [shape: f32[128,128], index: 6, kind: output, shape index: {}]  }
   0x1   :  { %13 = vsyncpa [#allocation5 + $0x1], 0  ;;  %s1033_s21 = smov 0   ;;  %s1035_s22 = smov 0  }
   0x2   :  { %s1037_s23 = smov 0   ;;  %s1039_s24 = smov 0  }
   0x3 LB: > { %s777_s25 = sadd.s32 4294967295, %s993_s24   ;;  %s778_s26 = sadd.s32 4294967294, %s993_s24   ;;  %s993_s24 = sphi %s1039_s24, %s1270_s24   ;;  %s989_s23 = sphi %s1037_s23, %s1269_s23   ;;  %s985_s22 = sphi %s1035_s22, %s1268_s22   ;;  %s981_s21 = sphi %s1033_s21, %s1267_s21  }
   0x4   : > { %s1056_s27 = sadd.s32 1, %s993_s24   ;;  %s26_s28 = sadd.s32 1, %s989_s23 }
   0x5   : > { %s23_s29 = ssub.s32 %s993_s24, %s1056_s27  ;;  %p33_p0 = scmp.ne.s32.totalorder %s989_s23, %s985_s22 }
   0x6   : > { %p24_p1 = scmp.eq.s32.totalorder %s23_s29, 0  ;;  %p34_p2 = scmp.eq.s32.totalorder %s993_s24, 0 }
   0x7   : > { %p173_p3 = scmp.eq.s32.totalorder %s777_s25, 3  ;;  %p178_p4 = scmp.ne.s32.totalorder %s985_s22, %s981_s21 }
   0x8   : > { %s1069_s30 = scalar_select %p24_p1, %s989_s23, %s26_s28  }
   0x9   : > { %p1071_p5 = por %p34_p2, %p33_p0  ;;  %p1075_p6 = por %p173_p3, %p33_p0 }
   0xa   : > { %p179_p7 = scmp.eq.s32.totalorder %s778_s26, 3  ;;  %p780_p9 = scmp.ge.s32.totalorder %s993_s24, 4 }
   0xc   : > { %p1079_p8 = por %p179_p7, %p178_p4  ;;  %207 = sbr.rel (%p780_p9) target bundleno = 33 (0x21), region = 32 }
  0x13   : > { %210 = sbr.rel (!%p1071_p5) target bundleno = 26 (0x1a), region = 36  ;;  %s212_s10 = sand.u32 (%p1071_p5), 1, %s989_s23  }
  0x14   : > { %s819_s11 = sshll.u32 (%p1071_p5), %s993_s24, 6  ;;  %s781_s12 = sshll.u32 (%p1071_p5), %s212_s10, 5 }
  0x15   : > { %s218_s15 = scalar_lea.vmem (%p1071_p5), %s1257_s0, %s819_s11  ;;  %s214_s16 = scalar_lea.vmem (%p1071_p5), [#allocation2], %s781_s12 }
  0x16   : > { %v252_v0 = vld [vmem:[%s218_s15] sm:$0xff] (%p1071_p5)  ;;  %v254_v1 = vld [vmem:[%s218_s15 + $0x10] sm:$0xff] (%p1071_p5) }
  0x17   : > { %v256_v2 = vld [vmem:[%s218_s15 + $0x20] sm:$0xff] (%p1071_p5)  ;;  %253 = vst [vmem:[%s214_s16] sm:$0xff] (%p1071_p5), %v252_v0  ;;  %255 = vst [vmem:[%s214_s16 + $0x8] sm:$0xff] (%p1071_p5), %v254_v1  ;;  %v258_v3 = vld [vmem:[%s218_s15 + $0x30] sm:$0xff] (%p1071_p5) }
  0x18   : > { %257 = vst [vmem:[%s214_s16 + $0x10] sm:$0xff] (%p1071_p5), %v256_v2  ;;  %259 = vst [vmem:[%s214_s16 + $0x18] sm:$0xff] (%p1071_p5), %v258_v3 }
  0x1a PF: > { %265 = sbr.rel (!%p1071_p5) target bundleno = 33 (0x21), region = 74  ;;  %s267_s17 = sand.u32 (%p1071_p5), 1, %s989_s23  }
  0x1b   : > { %s820_s18 = sshll.u32 (%p1071_p5), %s993_s24, 6  ;;  %s785_s19 = sshll.u32 (%p1071_p5), %s267_s17, 5 }
  0x1c   : > { %s722_s28 = scalar_lea.vmem (%p1071_p5), %s1258_s1, %s820_s18  ;;  %s269_s29 = scalar_lea.vmem (%p1071_p5), [#allocation3], %s785_s19 }
  0x1d   : > { %v788_v4 = vld [vmem:[%s722_s28 + $0x8] sm:$0xff] (%p1071_p5)  ;;  %v789_v5 = vld [vmem:[%s722_s28 + $0x18] sm:$0xff] (%p1071_p5) }
  0x1e   : > { %v790_v6 = vld [vmem:[%s722_s28 + $0x28] sm:$0xff] (%p1071_p5)  ;;  %309 = vst [vmem:[%s269_s29] sm:$0xff] (%p1071_p5), %v788_v4  ;;  %311 = vst [vmem:[%s269_s29 + $0x8] sm:$0xff] (%p1071_p5), %v789_v5  ;;  %v791_v7 = vld [vmem:[%s722_s28 + $0x38] sm:$0xff] (%p1071_p5) }
  0x1f   : > { %313 = vst [vmem:[%s269_s29 + $0x10] sm:$0xff] (%p1071_p5), %v790_v6  ;;  %315 = vst [vmem:[%s269_s29 + $0x18] sm:$0xff] (%p1071_p5), %v791_v7 }
  0x21 PF: > { %p792_p10 = scmp.ge.s32.totalorder %s993_s24, 1  ;;  %p320_p11 = scmp.lt.s32.totalorder %s993_s24, 5 }
  0x23   : > { %p321_p12 = pnand %p792_p10, %p320_p11 }
  0x24   : > { %s327_s7 = sand.u32 (!%p321_p12), 1, %s985_s22   ;;  %v907_v20 = vld [vmem:[%s1261_s4 + $0x40] sm:$0xff] (!%p321_p12)   ;;  %v909_v50 = vld [vmem:[%s1261_s4 + $0x48] sm:$0xff] (!%p321_p12)   ;;  %v911_v52 = vld [vmem:[%s1261_s4 + $0x50] sm:$0xff] (!%p321_p12)   ;;  %v446_v3 = vlaneseq (!%p321_p12)  ;;  %s821_s14 = sshll.u32 (!%p321_p12), %s777_s25, 9 }
  0x25   : > { %324 = sbr.rel (%p321_p12) target bundleno = 601 (0x259), region = 112  ;;  %s1103_s10 = sshll.u32 (!%p321_p12), %s327_s7, 5  ;;  %v908_v21 = vld [vmem:[%s1261_s4] sm:$0xff] (!%p321_p12)   ;;  %822 = vmatprep.subr.bf16.mxu0 (!%p321_p12), %v907_v20  ;;  %850 = vmatprep.subr.bf16.mxu1 (!%p321_p12), %v907_v20  ;;  %v910_v51 = vld [vmem:[%s1261_s4 + $0x8] sm:$0xff] (!%p321_p12)   ;;  %v912_v53 = vld [vmem:[%s1261_s4 + $0x10] sm:$0xff] (!%p321_p12)  }
  0x26   : > { %s329_s11 = scalar_lea.vmem (!%p321_p12), [#allocation2], %s1103_s10  ;;  %s336_s12 = scalar_lea.vmem (!%p321_p12), [#allocation3], %s1103_s10  ;;  %823 = vmatpush3.bf16.msra.mxu0 (!%p321_p12), %v908_v21  ;;  %858 = vmatpush3.bf16.msra.mxu1 (!%p321_p12), %v908_v21  ;;  %v913_v54 = vld [vmem:[%s1261_s4 + $0x58] sm:$0xff] (!%p321_p12)   ;;  %v915_v56 = vld [vmem:[%s1261_s4 + $0x60] sm:$0xff] (!%p321_p12)   ;;  %v917_v58 = vld [vmem:[%s1261_s4 + $0x68] sm:$0xff] (!%p321_p12)  }
  0x27   : > { %v371_v8 = vld [vmem:[%s329_s11] sm:$0xff] (!%p321_p12)  ;;  %v373_v10 = vld [vmem:[%s329_s11 + $0x10] sm:$0xff] (!%p321_p12)  ;;  %v372_v13 = vld [vmem:[%s329_s11 + $0x8] sm:$0xff] (!%p321_p12)  ;;  %824 = vmatprep.subr.bf16.mxu0 (!%p321_p12), %v909_v50  ;;  %851 = vmatprep.subr.bf16.mxu1 (!%p321_p12), %v909_v50  ;;  %s1212_s16 = scalar_lea.hbm (!%p321_p12), %s1263_s6, %s821_s14  ;;  %s1216_s17 = scalar_lea.sflag (!%p321_p12), [#allocation5], %s327_s7 }
  0x28   : > { %v375_v9 = vld [vmem:[%s336_s12] sm:$0xff] (!%p321_p12)  ;;  %v377_v12 = vld [vmem:[%s336_s12 + $0x10] sm:$0xff] (!%p321_p12)  ;;  %v376_v14 = vld [vmem:[%s336_s12 + $0x8] sm:$0xff] (!%p321_p12)  ;;  %s995_s18 = smov (!%p321_p12), [#allocation4]  }
  0x29   : > { %v379_v11 = vadd.f32 (!%p321_p12), %v375_v9, %v371_v8  ;;  %v385_v15 = vadd.f32 (!%p321_p12), %v377_v12, %v373_v10  ;;  %v374_v16 = vld [vmem:[%s329_s11 + $0x18] sm:$0xff] (!%p321_p12)  ;;  %v382_v18 = vadd.f32 (!%p321_p12), %v376_v14, %v372_v13  ;;  %v916_v57 = vld [vmem:[%s1261_s4 + $0x20] sm:$0xff] (!%p321_p12)   ;;  %v918_v59 = vld [vmem:[%s1261_s4 + $0x28] sm:$0xff] (!%p321_p12)   ;;  %s935_s19 = sshll.u32 (!%p321_p12), %s995_s18, 4  ;;  %s936_s19 = int_to_ptr.vmem [resolvable:$false] %s935_s19 }
  0x2a   : > { %v378_v17 = vld [vmem:[%s336_s12 + $0x18] sm:$0xff] (!%p321_p12)  ;;  %825 = vmatpush3.bf16.msra.mxu0 (!%p321_p12), %v910_v51  ;;  %859 = vmatpush3.bf16.msra.mxu1 (!%p321_p12), %v910_v51  ;;  %v919_v60 = vld [vmem:[%s1261_s4 + $0x70] sm:$0xff] (!%p321_p12)   ;;  %v464_v21 = vld [vmem:[%s1260_s3] sm:$0x3] (!%p321_p12)  ;;  %s366_s12 = scalar_lea.vmem (!%p321_p12), [#allocation4], %s1103_s10  ;;  %s937_s20 = scalar_lea.vmem (!%p321_p12), %s936_s19, 1024 }
  0x2b   : > { %380 = vadd.xlane.f32.xlu0 (!%p321_p12), %v379_v11  ;;  %386 = vadd.xlane.f32.xlu1 (!%p321_p12), %v385_v15  ;;  %v388_v19 = vadd.f32 (!%p321_p12), %v378_v17, %v374_v16  ;;  %v914_v55 = vld [vmem:[%s1261_s4 + $0x18] sm:$0xff] (!%p321_p12)   ;;  %v920_v61 = vld [vmem:[%s1261_s4 + $0x30] sm:$0xff] (!%p321_p12)   ;;  %s690_s13 = sshll.u32 (!%p321_p12), %s366_s12, 4  ;;  %s1207_s13 = int_to_ptr.vmem [resolvable:$true] %s690_s13 }
  0x2c   : > { %826 = vmatprep.subr.bf16.mxu0 %v911_v52  ;;  %852 = vmatprep.subr.bf16.mxu1 %v911_v52  ;;  %v921_v62 = vld [vmem:[%s1261_s4 + $0x78] sm:$0xff]   ;;  %s931_s25 = scalar_lea.vmem %s1207_s13, 512  ;;  %p938_p2 = scmp.lt.s32.totalorder %s1207_s13, %s936_s19 }
  0x2d   : > { %v922_v63 = vld [vmem:[%s1261_s4 + $0x38] sm:$0xff]   ;;  %p932_p13 = scmp.ne.s32.totalorder %s1207_s13, %s931_s25  ;;  %p939_p3 = scmp.lt.s32.totalorder %s937_s20, %s931_s25 }
  0x2e   : > { %827 = vmatpush3.bf16.msra.mxu0 %v912_v53  ;;  %860 = vmatpush3.bf16.msra.mxu1 %v912_v53 }
  0x2f   : > { %383 = vadd.xlane.f32.xlu0 %v382_v18  ;;  %389 = vadd.xlane.f32.xlu1 %v388_v19  ;;  %p933_p0 = pnand %p932_p13, %p1075_p6  ;;  %p940_p4 = por %p939_p3, %p938_p2 }
  0x30   : > { %828 = vmatprep.subr.bf16.mxu0 %v913_v54  ;;  %853 = vmatprep.subr.bf16.mxu1 %v913_v54 }
  0x31   : > { %p934_p1 = pneg %p933_p0 }
  0x32   : > { %829 = vmatpush3.bf16.msra.mxu0 %v914_v55  ;;  %861 = vmatpush3.bf16.msra.mxu1 %v914_v55 }
  0x33   : > { %830 = vmatprep.subr.bf16.mxu0 %v915_v56  ;;  %854 = vmatprep.subr.bf16.mxu1 %v915_v56  ;;  %p941_p5 = pnand %p940_p4, %p934_p1 }
  0x36   : > { %831 = vmatpush3.bf16.msra.mxu0 %v916_v57  ;;  %862 = vmatpush3.bf16.msra.mxu1 %v916_v57 }
  0x37   : > { %832 = vmatprep.subr.bf16.mxu0 %v917_v58  ;;  %855 = vmatprep.subr.bf16.mxu1 %v917_v58 }
  0x3a   : > { %833 = vmatpush3.bf16.msra.mxu0 %v918_v59  ;;  %863 = vmatpush3.bf16.msra.mxu1 %v918_v59 }
  0x3b   : > { %834 = vmatprep.subr.bf16.mxu0 %v919_v60  ;;  %856 = vmatprep.subr.bf16.mxu1 %v919_v60 }
  0x3e   : > { %835 = vmatpush3.bf16.msra.mxu0 %v920_v61  ;;  %864 = vmatpush3.bf16.msra.mxu1 %v920_v61 }
  0x3f   : > { %836 = vmatprep.subr.bf16.mxu0 %v921_v62  ;;  %857 = vmatprep.subr.bf16.mxu1 %v921_v62 }
  0x42   : > { %837 = vmatpush3.bf16.msra.mxu0 %v922_v63  ;;  %865 = vmatpush3.bf16.msra.mxu1 %v922_v63 }
  0xb8   : > { %v381_v22 = vpop.xlane.xlu0 %380  ;;  %v387_v24 = vpop.xlane.xlu1 %386 }
  0xb9   : > { %v392_v23 = vmul.f32 0.00390625, %v381_v22  ;;  %v394_v25 = vmul.f32 0.00390625, %v387_v24 }
  0xbb   : > { %v1113_v26 = vsub.f32 %v371_v8, %v392_v23  ;;  %v1115_v27 = vsub.f32 %v375_v9, %v392_v23  ;;  %v1117_v28 = vsub.f32 %v373_v10, %v394_v25  ;;  %v1119_v29 = vsub.f32 %v377_v12, %v394_v25 }
  0xbc   : > { %v384_v30 = vpop.xlane.xlu0 %383  ;;  %v390_v32 = vpop.xlane.xlu1 %389  ;;  %v447_v10 = vshrl.u32 %v446_v3, 7 }
  0xbd   : > { %v393_v31 = vmul.f32 0.00390625, %v384_v30  ;;  %v404_v33 = vmul.f32 %v1113_v26, %v1113_v26  ;;  %v405_v34 = vmul.f32 %v1115_v27, %v1115_v27  ;;  %v395_v35 = vmul.f32 0.00390625, %v390_v32 }
  0xbe   : > { %v408_v36 = vmul.f32 %v1117_v28, %v1117_v28  ;;  %v409_v37 = vmul.f32 %v1119_v29, %v1119_v29  ;;  %v452_v15 = vsub.s32 1, %v447_v10 }
  0xbf   : > { %v1129_v38 = vsub.f32 %v372_v13, %v393_v31  ;;  %v1131_v39 = vsub.f32 %v376_v14, %v393_v31  ;;  %v412_v40 = vadd.f32 %v405_v34, %v404_v33  ;;  %v1133_v41 = vsub.f32 %v374_v16, %v395_v35  ;;  %v444_v16 = vld [vmem:[%s1259_s2] sm:$0x3] }
  0xc0   : > { %v1135_v42 = vsub.f32 %v378_v17, %v395_v35  ;;  %v418_v43 = vadd.f32 %v409_v37, %v408_v36  ;;  %v448_v14 = vsub.s32 0, %v447_v10  ;;  %v453_v19 = vrot.slane %v444_v16, %v452_v15 }
  0xc1   : > { %413 = vadd.xlane.f32.xlu0 %v412_v40  ;;  %v406_v44 = vmul.f32 %v1129_v38, %v1129_v38  ;;  %v407_v45 = vmul.f32 %v1131_v39, %v1131_v39  ;;  %v410_v46 = vmul.f32 %v1133_v41, %v1133_v41  ;;  %v473_v30 = vrot.slane %v464_v21, %v452_v15 }
  0xc2   : > { %v411_v47 = vmul.f32 %v1135_v42, %v1135_v42  ;;  %v449_v18 = vrot.slane %v444_v16, %v448_v14  ;;  %v469_v25 = vrot.slane %v464_v21, %v448_v14 }
  0xc3   : > { %v415_v48 = vadd.f32 %v407_v45, %v406_v44 }
  0xc4   : > { %v421_v49 = vadd.f32 %v411_v47, %v410_v46 }
  0xc5   : > { %419 = vadd.xlane.f32.xlu0 %v418_v43  ;;  %416 = vadd.xlane.f32.xlu1 %v415_v48 }
  0xc9   : > { %422 = vadd.xlane.f32.xlu1 %v421_v49 }
 0x14e   : > { %v414_v0 = vpop.xlane.xlu0 %413 }
 0x14f   : > { %v424_v1 = vmul.f32 0.00390625, %v414_v0 }
 0x151   : > { %v428_v2 = vadd.f32 1e-05, %v424_v1 }
 0x152   : > { %v417_v4 = vpop.xlane.xlu1 %416  ;;  %v420_v5 = vpop.xlane.xlu0 %419 }
 0x153   : > { %923 = vrsqrt.f32 %v428_v2  ;;  %v425_v6 = vmul.f32 0.00390625, %v417_v4  ;;  %v426_v7 = vmul.f32 0.00390625, %v420_v5 }
 0x155   : > { %v429_v8 = vadd.f32 1e-05, %v425_v6  ;;  %v430_v9 = vadd.f32 1e-05, %v426_v7 }
 0x156   : > { %v423_v11 = vpop.xlane.xlu1 %422 }
 0x157   : > { %925 = vrsqrt.f32 %v429_v8  ;;  %v427_v12 = vmul.f32 0.00390625, %v423_v11 }
 0x158   : > { %927 = vrsqrt.f32 %v430_v9 }
 0x159   : > { %v431_v13 = vadd.f32 1e-05, %v427_v12 }
 0x15b   : > { %929 = vrsqrt.f32 %v431_v13 }
 0x15d   : > { %v924_v17 = vpop.eup %923 }
 0x15e   : > { %v437_v20 = vmul.f32 %v924_v17, %v1115_v27  ;;  %v436_v22 = vmul.f32 %v924_v17, %v1113_v26 }
 0x160   : > { %v457_v24 = vmul.f32 %v453_v19, %v437_v20  ;;  %v456_v31 = vmul.f32 %v449_v18, %v436_v22 }
 0x161   : > { %v926_v23 = vpop.eup %925 }
 0x162   : > { %v928_v32 = vpop.eup %927  ;;  %v439_v33 = vmul.f32 %v926_v23, %v1131_v39  ;;  %v438_v34 = vmul.f32 %v926_v23, %v1129_v38  ;;  %v477_v43 = vadd.f32 %v473_v30, %v457_v24  ;;  %v476_v44 = vadd.f32 %v469_v25, %v456_v31 }
 0x163   : > { %v441_v35 = vmul.f32 %v928_v32, %v1119_v29  ;;  %v440_v27 = vmul.f32 %v928_v32, %v1117_v28 }
 0x164   : > { %v459_v36 = vmul.f32 %v453_v19, %v439_v33  ;;  %v458_v37 = vmul.f32 %v449_v18, %v438_v34 }
 0x165   : > { %v930_v40 = vpop.eup %929  ;;  %v461_v26 = vmul.f32 %v453_v19, %v441_v35  ;;  %v460_v45 = vmul.f32 %v449_v18, %v440_v27 }
 0x166   : > { %v479_v46 = vadd.f32 %v473_v30, %v459_v36  ;;  %v478_v47 = vadd.f32 %v469_v25, %v458_v37  ;;  %v443_v48 = vmul.f32 %v930_v40, %v1135_v42  ;;  %v442_v49 = vmul.f32 %v930_v40, %v1133_v41  ;;  %v796_v41 = vld [vmem:[%s1262_s5] ss:$0 sm:$0xff] }
 0x167   : > { %v481_v29 = vadd.f32 %v473_v30, %v461_v26  ;;  %v480_v52 = vadd.f32 %v469_v25, %v460_v45 }
 0x168   : > { %v485_v39 = vpack.c.bf16 %v479_v46, %v477_v43  ;;  %v484_v50 = vpack.c.bf16 %v478_v47, %v476_v44  ;;  %v463_v38 = vmul.f32 %v453_v19, %v443_v48  ;;  %v462_v51 = vmul.f32 %v449_v18, %v442_v49 }
 0x16a   : > { %655 = vmatprep.mubr.bf16.mxu0 %v485_v39  ;;  %v483_v28 = vadd.f32 %v473_v30, %v463_v38  ;;  %v482_v53 = vadd.f32 %v469_v25, %v462_v51 }
 0x16b   : > { %656 = vmatmul.mubr.bf16.vlgmr.msra.gmra.mrb[0].mxu0 %v484_v50 }
 0x16c   : > { %v487_v54 = vpack.c.bf16 %v483_v28, %v481_v29  ;;  %v486_v55 = vpack.c.bf16 %v482_v53, %v480_v52 }
 0x16e   : > { %663 = vmatprep.mubr.bf16.mxu1 %v487_v54 }
 0x16f   : > { %664 = vmatmul.mubr.bf16.vlgmr.msra.gmra.mrb[0].mxu1 %v486_v55 }
 0x23e   : > { %v838_v56 = vpop.f32.mrb[0].mxu0 }
 0x23f   : > { %v839_v42 = vpop.f32.mrb[1].mxu0 }
 0x240   : > { %v840_v57 = vadd.f32 %v839_v42, %v838_v56  ;;  %v841_v58 = vpop.f32.mrb[2].mxu0 }
 0x241   : > { %v842_v59 = vpop.f32.mrb[3].mxu0 }
 0x242   : > { %v658_v60 = vadd.f32 %v840_v57, %v796_v41  ;;  %v843_v61 = vadd.f32 %v842_v59, %v841_v58  ;;  %v844_v62 = vpop.f32.mrb[0].mxu1 }
 0x243   : > { %v845_v63 = vpop.f32.mrb[1].mxu1 }
 0x244   : > { %672 = vst [vmem:[%s366_s12] sm:$0xff] %v658_v60  ;;  %v661_v0 = vadd.f32 %v843_v61, %v796_v41  ;;  %v846_v1 = vadd.f32 %v845_v63, %v844_v62  ;;  %v847_v2 = vpop.f32.mrb[2].mxu1 }
 0x245   : > { %v848_v3 = vpop.f32.mrb[3].mxu1 }
 0x246   : > { %673 = vst [vmem:[%s366_s12 + $0x8] sm:$0xff] %v661_v0  ;;  %v666_v4 = vadd.f32 %v846_v1, %v796_v41  ;;  %v849_v5 = vadd.f32 %v848_v3, %v847_v2 }
 0x248   : > { %674 = vst [vmem:[%s366_s12 + $0x10] sm:$0xff] %v666_v4  ;;  %v669_v6 = vadd.f32 %v849_v5, %v796_v41 }
 0x24a   : > { %675 = vst [vmem:[%s366_s12 + $0x18] sm:$0xff] %v669_v6 }
 0x24b   : > { %944 = shalt.err (!%p941_p5)
}
 0x24c   : > { %s945_s7 = scalar_lea.hbm %s1212_s16, 512  ;;  %s949_s29 = scalar_lea.hbm %s1263_s6, 2048 }
 0x24d   : > { %p946_p7 = scmp.ne.s32.totalorder %s1212_s16, %s945_s7  ;;  %p950_p11 = scmp.lt.u32.totalorder %s1212_s16, %s1263_s6 }
 0x24e   : > { %p951_p12 = scmp.lt.u32.totalorder %s949_s29, %s945_s7  ;;  %p953_p0 = scmp.lt.u32.totalorder %s945_s7, %s1212_s16 }
 0x24f   : > { %p947_p9 = pnand %p946_p7, %p1075_p6 }
 0x250   : > { %p952_p13 = por %p951_p12, %p950_p11 }
 0x251   : > { %p948_p10 = pneg %p947_p9 }
 0x252   : > { %p954_p1 = por %p953_p0, %p952_p13 }
 0x254   : > { %p955_p2 = pnand %p954_p1, %p948_p10 }
 0x256   : > { %958 = shalt.err (!%p955_p2)
}
 0x257   : > { %s996_s14 = smov 128   ;;  %s997_s10 = smov 8  }
 0x258   : > { %866 = dma.vmem_to_hbm [thread:$0]  (%p1075_p6), %s1207_s13, 512, %s1212_s16, %s1216_s17, %s996_s14, %s996_s14, %s997_s10  }
 0x259 PF: > { %p872_p3 = scmp.ge.s32.totalorder %s993_s24, 2  ;;  %s705_s15 = sand.u32 1, %s981_s21  }
 0x25a   : > { %s706_s25 = scalar_lea.sflag [#allocation5], %s705_s15 }
 0x25b   : > { %p869_p4 = pnand %p872_p3, %p1079_p8 }
 0x25d   : > { %976 = dma.done.wait (!%p869_p4), %s706_s25, 512  }
 0x25e   : > { %978 = vsyncadd (!%p869_p4), %s706_s25, 4294966784  ;;  %p16_p5 = scmp.ge.s32.totalorder %s1056_s27, 6   ;;  %s1267_s21 = smov %s985_s22 }
 0x25f   : > { %s1268_s22 = smov %s989_s23  ;;  %s1269_s23 = smov %s1069_s30 }
 0x260   : > { %s1270_s24 = smov %s1056_s27  ;;  %18 = sbr.rel (!%p16_p5) target bundleno = 3 (0x3), region = 168 }
 0x267   :  { %711 = vsyncpa [#allocation5], 1 }
 0x268   :  { %713 = vsyncpa [#allocation5 + $0x1], 1 }

</bundles_post_ra>
